<compile_context>
chip_gen: v6e
topology: v6e:2x2x1
jax: 0.10.0
libtpu: 0.0.40
codegen_flags: <defaults>
</compile_context>

<pallas_src>
import jax
import jax.numpy as jnp
import numpy as np
from jax import lax
from jax.experimental import pallas as pl
from jax.experimental.pallas import tpu as pltpu

EPS = 1e-5
LANE = 128          # TPU lane width; pad channel-like dims to this.


def _round_up(x, m):
    return ((x + m - 1) // m) * m


def _pad_last(a, n):
    pad = n - a.shape[-1]
    if pad == 0:
        return a
    return jnp.pad(a, [(0, 0)] * (a.ndim - 1) + [(0, pad)])


# ----------------------------------------------------------------------------
# Pallas kernels
# ----------------------------------------------------------------------------
def _matmul_bn_relu_kernel(x_ref, w_ref, scale_ref, shift_ref, o_ref):
    # x: (TM, Kp) bf16, w: (Kp, Np) bf16, scale/shift: (1, Np) f32
    # o: (TM, Np) f32   ->   relu((x @ w) * scale + shift)
    acc = jnp.dot(x_ref[...], w_ref[...], preferred_element_type=jnp.float32)
    o_ref[...] = jnp.maximum(acc * scale_ref[...] + shift_ref[...], 0.0)


def _xcorr_kernel(s_ref, k_ref, o_ref, acc_ref):
    # Channels-last depthwise cross-correlation, one batch element per step.
    #   s: (1, Hs, Ws, C)  search features   (C = 128-padded hidden, lanes)
    #   k: (1, Hk, Wk, C)  template features
    #   o: (1, Ho, Wo, C)
    #   acc_ref: VMEM scratch (1, Ho, Wo, C) f32
    # out[0,i,j,c] = sum_{p,q} s[0,i+p,j+q,c] * k[0,p,q,c]
    _, Hk, Wk, C = k_ref.shape
    _, Ho, Wo, _ = o_ref.shape

    acc_ref[...] = jnp.zeros_like(acc_ref)

    def tap_row(p, carry):
        # dynamic offset p on an outer dim; q is static (small unroll).
        for q in range(Wk):
            win = s_ref[:, pl.ds(p, Ho), pl.ds(q, Wo), :]       # (1, Ho, Wo, C)
            kv = k_ref[:, pl.ds(p, 1), pl.ds(q, 1), :]          # (1, 1, 1, C)
            acc_ref[...] += win * kv
        return carry

    lax.fori_loop(0, Hk, tap_row, 0)
    o_ref[...] = acc_ref[...]


def _head_kernel(x_ref, w1_ref, sc_ref, sh_ref, w2_ref, b2_ref, o_ref):
    # Fused 1x1 conv -> BN -> ReLU -> 1x1 conv (+bias), as two MXU matmuls.
    # x: (TM, C) bf16, w1: (C, C) bf16, sc/sh: (1, C) f32,
    # w2: (C, No) bf16, b2: (1, No) f32, o: (TM, No) f32
    h = jnp.dot(x_ref[...], w1_ref[...], preferred_element_type=jnp.float32)
    h = jnp.maximum(h * sc_ref[...] + sh_ref[...], 0.0)
    o_ref[...] = (
        jnp.dot(h.astype(jnp.bfloat16), w2_ref[...],
                preferred_element_type=jnp.float32) + b2_ref[...]
    )


# ----------------------------------------------------------------------------
# Glue: BN folding, im2col, layout plumbing
# ----------------------------------------------------------------------------
def _fold_bn(bn, n_pad):
    gamma, beta, mean, var = bn
    scale = gamma / jnp.sqrt(var + EPS)
    shift = beta - mean * scale
    return (_pad_last(scale.reshape(1, -1), n_pad).astype(jnp.float32),
            _pad_last(shift.reshape(1, -1), n_pad).astype(jnp.float32))


def _im2col(x, k):
    # x: (B, C, H, W) -> (B*oh*ow, C*k*k), column order = (c, kh, kw)
    B, C, H, W = x.shape
    oh, ow = H - k + 1, W - k + 1
    cols = []
    for kh in range(k):
        for kw in range(k):
            cols.append(x[:, :, kh:kh + oh, kw:kw + ow])
    p = jnp.stack(cols, axis=2)                 # (B, C, k*k, oh, ow)
    p = p.transpose(0, 3, 4, 1, 2)              # (B, oh, ow, C, k*k)
    return p.reshape(B * oh * ow, C * k * k), (B, oh, ow)


def conv_bn_relu(x, w, bn, *, tm_max=256):
    # x: (B, Cin, H, W) NCHW, w: (hidden, Cin, k, k)
    # returns channels-last features (B, oh, ow, Np), Np = round_up(hidden,128)
    hidden = w.shape[0]
    k = w.shape[-1]
    cols, (B, oh, ow) = _im2col(x, k)
    M, K = cols.shape
    Kp = _round_up(K, LANE)
    Np = _round_up(hidden, LANE)
    TM = min(tm_max, _round_up(M, 8))           # M tile (multiple of 8)
    Mp = _round_up(M, TM)

    cols = jnp.pad(cols, ((0, Mp - M), (0, Kp - K))).astype(jnp.bfloat16)
    w2d = jnp.pad(w.reshape(hidden, -1).T,
                  ((0, Kp - K), (0, Np - hidden))).astype(jnp.bfloat16)
    scale, shift = _fold_bn(bn, Np)

    out = pl.pallas_call(
        _matmul_bn_relu_kernel,
        out_shape=jax.ShapeDtypeStruct((Mp, Np), jnp.float32),
        grid=(Mp // TM,),
        in_specs=[
            pl.BlockSpec((TM, Kp), lambda i: (i, 0)),     # activations: tiled M
            pl.BlockSpec((Kp, Np), lambda i: (0, 0)),     # weights: resident
            pl.BlockSpec((1, Np), lambda i: (0, 0)),      # BN scale: resident
            pl.BlockSpec((1, Np), lambda i: (0, 0)),      # BN shift: resident
        ],
        out_specs=pl.BlockSpec((TM, Np), lambda i: (i, 0)),
        compiler_params=pltpu.CompilerParams(
            dimension_semantics=("parallel",)),
    )(cols, w2d, scale, shift)
    return out[:M].reshape(B, oh, ow, Np)       # channels-last, no transpose


def xcorr_depthwise_nhwc(search, kernel):
    # search: (B, Hs, Ws, C), kernel: (B, Hk, Wk, C) -> (B, Ho, Wo, C)
    B, Hs, Ws, C = search.shape
    _, Hk, Wk, _ = kernel.shape
    Ho, Wo = Hs - Hk + 1, Ws - Wk + 1
    return pl.pallas_call(
        _xcorr_kernel,
        out_shape=jax.ShapeDtypeStruct((B, Ho, Wo, C), jnp.float32),
        grid=(B,),
        in_specs=[
            pl.BlockSpec((1, Hs, Ws, C), lambda b: (b, 0, 0, 0)),
            pl.BlockSpec((1, Hk, Wk, C), lambda b: (b, 0, 0, 0)),
        ],
        out_specs=pl.BlockSpec((1, Ho, Wo, C), lambda b: (b, 0, 0, 0)),
        scratch_shapes=[pltpu.VMEM((1, Ho, Wo, C), jnp.float32)],
        compiler_params=pltpu.CompilerParams(
            dimension_semantics=("parallel",)),
    )(search, kernel)


def head(feat, w1, bn1, w2, b2, *, tm_max=256):
    # feat: (B, Ho, Wo, C) channels-last (C = 128-padded hidden)
    B, Ho, Wo, C = feat.shape
    hidden = w1.shape[0]
    out_ch = w2.shape[0]
    No = _round_up(out_ch, LANE)
    M = B * Ho * Wo
    TM = min(tm_max, _round_up(M, 8))
    Mp = _round_up(M, TM)

    x2d = jnp.pad(feat.reshape(M, C), ((0, Mp - M), (0, 0))).astype(jnp.bfloat16)
    w1m = jnp.pad(w1.reshape(hidden, hidden).T,
                  ((0, C - hidden), (0, C - hidden))).astype(jnp.bfloat16)
    w2m = jnp.pad(w2.reshape(out_ch, hidden).T,
                  ((0, C - hidden), (0, No - out_ch))).astype(jnp.bfloat16)
    sc, sh = _fold_bn(bn1, C)
    b2p = _pad_last(b2.reshape(1, -1), No).astype(jnp.float32)

    out = pl.pallas_call(
        _head_kernel,
        out_shape=jax.ShapeDtypeStruct((Mp, No), jnp.float32),
        grid=(Mp // TM,),
        in_specs=[
            pl.BlockSpec((TM, C), lambda i: (i, 0)),
            pl.BlockSpec((C, C), lambda i: (0, 0)),
            pl.BlockSpec((1, C), lambda i: (0, 0)),
            pl.BlockSpec((1, C), lambda i: (0, 0)),
            pl.BlockSpec((C, No), lambda i: (0, 0)),
            pl.BlockSpec((1, No), lambda i: (0, 0)),
        ],
        out_specs=pl.BlockSpec((TM, No), lambda i: (i, 0)),
        compiler_params=pltpu.CompilerParams(
            dimension_semantics=("parallel",)),
    )(x2d, w1m, sc, sh, w2m, b2p)

    out = out[:M, :out_ch].reshape(B, Ho, Wo, out_ch)
    return jnp.transpose(out, (0, 3, 1, 2))     # back to external NCHW


def depthwise_xcorr_forward(z, x, params):
    kf = conv_bn_relu(z, params["wk"], params["bn_k"])   # (B, hk, wk, 128)
    sf = conv_bn_relu(x, params["ws"], params["bn_s"])   # (B, hs, ws, 128)
    feat = xcorr_depthwise_nhwc(sf, kf)                  # (B, ho, wo, 128)
    return head(feat, params["w1"], params["bn1"], params["w2"], params["b2"])


# ----------------------------------------------------------------------------
# Pure-JAX reference (for correctness check)
# ----------------------------------------------------------------------------
def _reference(z, x, params):
    def conv(inp, w, groups=1):
        return jax.lax.conv_general_dilated(
            inp, w, window_strides=(1, 1), padding="VALID",
            dimension_numbers=("NCHW", "OIHW", "NCHW"),
            feature_group_count=groups)

    def bn(y, p):
        gamma, beta, mean, var = p
        s = gamma / jnp.sqrt(var + EPS)
        return y * s[None, :, None, None] + (beta - mean * s)[None, :, None, None]

    kf = jax.nn.relu(bn(conv(z, params["wk"]), params["bn_k"]))
    sf = jax.nn.relu(bn(conv(x, params["ws"]), params["bn_s"]))
    B, C, Hs, Ws = sf.shape
    _, _, Hk, Wk = kf.shape
    feat = conv(sf.reshape(1, B * C, Hs, Ws),
                kf.reshape(B * C, 1, Hk, Wk), groups=B * C)
    feat = feat.reshape(B, C, feat.shape[2], feat.shape[3])
    h = jax.nn.relu(bn(conv(feat, params["w1"]), params["bn1"]))
    return conv(h, params["w2"]) + params["b2"][None, :, None, None]


# ----------------------------------------------------------------------------
# Main
# ----------------------------------------------------------------------------
if __name__ == "__main__":
    B, Cin, hidden, out_ch = 2, 4, 16, 8
    Hk = Wk = 8      # template ("kernel") input spatial size
    Hs = Ws = 16     # search input spatial size

    key = jax.random.PRNGKey(0)
    ks = jax.random.split(key, 12)

    def bn_params(k, n):
        k1, k2, k3, k4 = jax.random.split(k, 4)
        gamma = 1.0 + 0.1 * jax.random.normal(k1, (n,), jnp.float32)
        beta = 0.1 * jax.random.normal(k2, (n,), jnp.float32)
        mean = 0.1 * jax.random.normal(k3, (n,), jnp.float32)
        var = 0.5 + jax.random.uniform(k4, (n,), jnp.float32)
        return (gamma, beta, mean, var)

    params = {
        "wk": 0.1 * jax.random.normal(ks[0], (hidden, Cin, 3, 3), jnp.float32),
        "bn_k": bn_params(ks[1], hidden),
        "ws": 0.1 * jax.random.normal(ks[2], (hidden, Cin, 3, 3), jnp.float32),
        "bn_s": bn_params(ks[3], hidden),
        "w1": 0.1 * jax.random.normal(ks[4], (hidden, hidden, 1, 1), jnp.float32),
        "bn1": bn_params(ks[5], hidden),
        "w2": 0.1 * jax.random.normal(ks[6], (out_ch, hidden, 1, 1), jnp.float32),
        "b2": 0.1 * jax.random.normal(ks[7], (out_ch,), jnp.float32),
    }

    z = jax.random.normal(ks[8], (B, Cin, Hk, Wk), jnp.float32)   # template
    x = jax.random.normal(ks[9], (B, Cin, Hs, Ws), jnp.float32)   # search

    out = depthwise_xcorr_forward(z, x, params)
    out = jax.block_until_ready(out)

    ref = jax.block_until_ready(_reference(z, x, params))
    assert out.shape == (B, out_ch, Hs - Hk + 1, Ws - Wk + 1), out.shape
    np.testing.assert_allclose(np.asarray(out), np.asarray(ref),
                               rtol=2e-2, atol=2e-2)
    print("KERNEL_OK")
</pallas_src>

<mosaic_0001>
module attributes {stable_mosaic.version = 11 : i64} {
  func.func @_matmul_bn_relu_kernel(%arg0: i32, %arg1: memref<72x128xbf16, #tpu.memory_space<vmem>>, %arg2: memref<128x128xbf16, #tpu.memory_space<vmem>>, %arg3: memref<1x128xf32, #tpu.memory_space<vmem>>, %arg4: memref<1x128xf32, #tpu.memory_space<vmem>>, %arg5: memref<72x128xf32, #tpu.memory_space<vmem>>) attributes {dimension_semantics = [#tpu.dimension_semantics<parallel>], iteration_bounds = array<i64: 1>, scalar_prefetch = 0 : i64, scratch_operands = 0 : i64, tpu.core_type = #tpu.core_type<tc>, window_params = [{transform_indices = @transform_0, window_bounds = array<i64: 72, 128>}, {pipeline_mode = #tpu.pipeline_mode<synchronous>, transform_indices = @transform_1, window_bounds = array<i64: 128, 128>}, {pipeline_mode = #tpu.pipeline_mode<synchronous>, transform_indices = @transform_2, window_bounds = array<i64: 1, 128>}, {pipeline_mode = #tpu.pipeline_mode<synchronous>, transform_indices = @transform_3, window_bounds = array<i64: 1, 128>}, {transform_indices = @transform_4, window_bounds = array<i64: 72, 128>}]} {
    %c0 = arith.constant 0 : index
    %c0_0 = arith.constant 0 : index
    %0 = vector.load %arg1[%c0, %c0_0] : memref<72x128xbf16, #tpu.memory_space<vmem>>, vector<72x128xbf16>
    %c0_1 = arith.constant 0 : index
    %c0_2 = arith.constant 0 : index
    %1 = vector.load %arg2[%c0_1, %c0_2] : memref<128x128xbf16, #tpu.memory_space<vmem>>, vector<128x128xbf16>
    %cst = arith.constant dense<0.000000e+00> : vector<72x128xf32>
    %2 = tpu.matmul %0, %1, %cst {dimension_numbers = #tpu.dot_dimension_numbers<[1], [0], [0], [1], [0, 0, 1, 1], [], []>} : vector<72x128xbf16>, vector<128x128xbf16>, vector<72x128xf32> -> vector<72x128xf32>
    %c0_3 = arith.constant 0 : index
    %c0_4 = arith.constant 0 : index
    %3 = vector.load %arg3[%c0_3, %c0_4] : memref<1x128xf32, #tpu.memory_space<vmem>>, vector<1x128xf32>
    %4 = vector.broadcast %3 : vector<1x128xf32> to vector<72x128xf32>
    %5 = arith.mulf %2, %4 : vector<72x128xf32>
    %c0_5 = arith.constant 0 : index
    %c0_6 = arith.constant 0 : index
    %6 = vector.load %arg4[%c0_5, %c0_6] : memref<1x128xf32, #tpu.memory_space<vmem>>, vector<1x128xf32>
    %7 = vector.broadcast %6 : vector<1x128xf32> to vector<72x128xf32>
    %8 = arith.addf %5, %7 : vector<72x128xf32>
    %cst_7 = arith.constant 0.000000e+00 : f32
    %9 = vector.broadcast %cst_7 : f32 to vector<72x128xf32>
    %10 = arith.maximumf %8, %9 : vector<72x128xf32>
    %c0_8 = arith.constant 0 : index
    %c0_9 = arith.constant 0 : index
    %11 = vector.load %arg5[%c0_8, %c0_9] : memref<72x128xf32, #tpu.memory_space<vmem>>, vector<72x128xf32>
    tpu.vector_store %arg5[%c0_8, %c0_9], %10 {strides = array<i32>} : memref<72x128xf32, #tpu.memory_space<vmem>>, vector<72x128xf32>,
    return
  }
  func.func @transform_0(%arg0: i32) -> (i32, i32) {
    %c0_i32 = arith.constant 0 : i32
    %c0_i32_0 = arith.constant 0 : i32
    return %arg0, %c0_i32 : i32, i32
  }
  func.func @transform_1(%arg0: i32) -> (i32, i32) {
    %c0_i32 = arith.constant 0 : i32
    %c0_i32_0 = arith.constant 0 : i32
    %c0_i32_1 = arith.constant 0 : i32
    return %c0_i32, %c0_i32_0 : i32, i32
  }
  func.func @transform_2(%arg0: i32) -> (i32, i32) {
    %c0_i32 = arith.constant 0 : i32
    %c0_i32_0 = arith.constant 0 : i32
    %c0_i32_1 = arith.constant 0 : i32
    return %c0_i32, %c0_i32_0 : i32, i32
  }
  func.func @transform_3(%arg0: i32) -> (i32, i32) {
    %c0_i32 = arith.constant 0 : i32
    %c0_i32_0 = arith.constant 0 : i32
    %c0_i32_1 = arith.constant 0 : i32
    return %c0_i32, %c0_i32_0 : i32, i32
  }
  func.func @transform_4(%arg0: i32) -> (i32, i32) {
    %c0_i32 = arith.constant 0 : i32
    %c0_i32_0 = arith.constant 0 : i32
    return %arg0, %c0_i32 : i32, i32
  }
}

</mosaic_0001>

<bundles_post_ra>
// kernel: tpu_custom_call.1
= control target key start
LH: loop header
LB: loop body
LE: loop exit
PB: predicated region body
PF: predicated region fallthrough
CT: control target
= control target key end

     0   :  { %9 = vsyncpa [#allocation3], 0  ;;  %s510_s0 = inlined_call_operand.hbm [shape: bf16[72,128], index: 0, kind: input, shape index: {}]   ;;  %s511_s1 = inlined_call_operand.hbm [shape: bf16[128,128], index: 1, kind: input, shape index: {}]   ;;  %s512_s2 = inlined_call_operand.vmem [shape: f32[1,128], index: 2, kind: input, shape index: {}]   ;;  %s513_s3 = inlined_call_operand.vmem [shape: f32[1,128], index: 3, kind: input, shape index: {}]   ;;  %s514_s4 = inlined_call_operand.hbm [shape: f32[72,128], index: 4, kind: output, shape index: {}]  }
   0x1   :  { %10 = vsyncpa [#allocation6], 0 }
   0x2   :  { %11 = vsyncpa [#allocation4], 0  ;;  %s456_s15 = smov [#allocation2]  }
   0x3   :  { %s17_s16 = sshll.u32 %s456_s15, 4  ;;  %s18_s16 = int_to_ptr.vmem [resolvable:$true] %s17_s16 }
   0x4   :  { %s398_s17 = scalar_lea.vmem %s18_s16, 576  ;;  %p403_p1 = scmp.lt.s32.totalorder %s18_s16, %s18_s16 }
   0x5   :  { %p399_p0 = scmp.ne.s32.totalorder %s18_s16, %s398_s17  ;;  %p404_p2 = scmp.lt.s32.totalorder %s398_s17, %s398_s17 }
   0x7   :  { %p405_p3 = por %p404_p2, %p403_p1 }
   0x9   :  { %p406_p4 = pnand %p405_p3, %p399_p0 }
   0xb   :  { %409 = shalt.err (!%p406_p4)
}
   0xc   :  { %s457_s18 = smov 64   ;;  %s458_s19 = smov 4  }
   0xd   :  { %23 = dma.hbm_to_vmem [thread:$0]  %s510_s0, 576, %s18_s16, [#allocation3], %s457_s18, %s457_s18, %s458_s19  }
   0xe   :  { %s459_s22 = smov [#allocation5]  }
   0xf   :  { %s29_s23 = sshll.u32 %s459_s22, 4  ;;  %s30_s23 = int_to_ptr.vmem [resolvable:$true] %s29_s23 }
  0x10   :  { %s418_s24 = scalar_lea.vmem %s30_s23, 1024  ;;  %p423_p6 = scmp.lt.s32.totalorder %s30_s23, %s30_s23 }
  0x11   :  { %p419_p5 = scmp.ne.s32.totalorder %s30_s23, %s418_s24  ;;  %p424_p7 = scmp.lt.s32.totalorder %s418_s24, %s418_s24 }
  0x13   :  { %p425_p8 = por %p424_p7, %p423_p6 }
  0x15   :  { %p426_p9 = pnand %p425_p8, %p419_p5 }
  0x17   :  { %429 = shalt.err (!%p426_p9)
}
  0x18   :  { %35 = dma.hbm_to_vmem [thread:$0]  %s511_s1, 1024, %s30_s23, [#allocation6], %s457_s18, %s457_s18, %s458_s19  }
  0x19   :  { %450 = dma.done.wait [#allocation3], 576  }
  0x1a   :  { %451 = vsyncadd [#allocation3], 4294966720 }
  0x1b   :  { %452 = dma.done.wait [#allocation6], 1024  }
  0x1c   :  { %453 = vsyncadd [#allocation6], 4294966272  ;;  %v460_v0 = vmov 0.0   ;;  %vm461_vm0 = vmmov 0   ;;  %v377_v1 = vld [vmem:[#allocation5 + $0x38] sm:$0xff]   ;;  %v378_v2 = vld [vmem:[#allocation5 + $0x30] sm:$0xff]  }
  0x1d   :  { %316 = vmatprep.subr.bf16.mxu0 %v460_v0  ;;  %352 = vmatprep.subr.bf16.mxu1 %v460_v0  ;;  %v379_v3 = vld [vmem:[#allocation5 + $0x28] sm:$0xff]   ;;  %v380_v4 = vld [vmem:[#allocation5 + $0x20] sm:$0xff]   ;;  %v381_v5 = vld [vmem:[#allocation5 + $0x18] sm:$0xff]  }
  0x1e   :  { %332 = vmatprep.mubr.msk.bf16.mxu0 %vm461_vm0, %v460_v0  ;;  %344 = vmatprep.mubr.msk.bf16.mxu1 %vm461_vm0, %v460_v0  ;;  %v382_v6 = vld [vmem:[#allocation5 + $0x10] sm:$0xff]   ;;  %v383_v7 = vld [vmem:[#allocation5 + $0x8] sm:$0xff]   ;;  %v384_v8 = vld [vmem:[#allocation5] sm:$0xff]  }
  0x1f   :  { %317 = vmatpush3.bf16.msra.mxu0 %v377_v1  ;;  %360 = vmatpush3.bf16.msra.mxu1 %v377_v1  ;;  %v385_v9 = vld [vmem:[#allocation2] sm:$0xff]   ;;  %v386_v10 = vld [vmem:[#allocation2 + $0x18] sm:$0xff]   ;;  %v387_v11 = vld [vmem:[#allocation2 + $0x8] sm:$0xff]  }
  0x20   :  { %318 = vmatprep.subr.bf16.mxu0 %v460_v0  ;;  %353 = vmatprep.subr.bf16.mxu1 %v460_v0  ;;  %v388_v12 = vld [vmem:[#allocation2 + $0x20] ss:$0 sps:$4 sm:$0xff]   ;;  %v389_v13 = vld [vmem:[#allocation2 + $0x10] sm:$0xff]  }
  0x21   :  { %v301_v14 = vld [vmem:[%s512_s2] ss:$0 sm:$0xff]  ;;  %s462_s2 = smov [#allocation7]  }
  0x22   :  { %v302_v16 = vld [vmem:[%s513_s3] ss:$0 sm:$0xff]  ;;  %s275_s3 = sshll.u32 %s462_s2, 4  ;;  %s276_s3 = int_to_ptr.vmem [resolvable:$true] %s275_s3 }
  0x23   :  { %319 = vmatpush3.bf16.msra.mxu0 %v378_v2  ;;  %361 = vmatpush3.bf16.msra.mxu1 %v378_v2  ;;  %s430_s29 = scalar_lea.vmem %s276_s3, 1152  ;;  %p435_p11 = scmp.lt.s32.totalorder %s276_s3, %s276_s3 }
  0x24   :  { %320 = vmatprep.subr.bf16.mxu0 %v460_v0  ;;  %354 = vmatprep.subr.bf16.mxu1 %v460_v0  ;;  %p431_p10 = scmp.ne.s32.totalorder %s276_s3, %s430_s29  ;;  %p436_p12 = scmp.lt.s32.totalorder %s430_s29, %s430_s29 }
  0x26   :  { %p437_p13 = por %p436_p12, %p435_p11 }
  0x27   :  { %321 = vmatpush3.bf16.msra.mxu0 %v379_v3  ;;  %362 = vmatpush3.bf16.msra.mxu1 %v379_v3 }
  0x28   :  { %322 = vmatprep.subr.bf16.mxu0 %v460_v0  ;;  %355 = vmatprep.subr.bf16.mxu1 %v460_v0  ;;  %p438_p0 = pnand %p437_p13, %p431_p10 }
  0x2b   :  { %323 = vmatpush3.bf16.msra.mxu0 %v380_v4  ;;  %363 = vmatpush3.bf16.msra.mxu1 %v380_v4 }
  0x2c   :  { %324 = vmatprep.subr.bf16.mxu0 %v460_v0  ;;  %356 = vmatprep.subr.bf16.mxu1 %v460_v0 }
  0x2f   :  { %325 = vmatpush3.bf16.msra.mxu0 %v381_v5  ;;  %364 = vmatpush3.bf16.msra.mxu1 %v381_v5 }
  0x30   :  { %326 = vmatprep.subr.bf16.mxu0 %v460_v0  ;;  %357 = vmatprep.subr.bf16.mxu1 %v460_v0 }
  0x33   :  { %327 = vmatpush3.bf16.msra.mxu0 %v382_v6  ;;  %365 = vmatpush3.bf16.msra.mxu1 %v382_v6 }
  0x34   :  { %328 = vmatprep.subr.bf16.mxu0 %v460_v0  ;;  %358 = vmatprep.subr.bf16.mxu1 %v460_v0 }
  0x37   :  { %329 = vmatpush3.bf16.msra.mxu0 %v383_v7  ;;  %366 = vmatpush3.bf16.msra.mxu1 %v383_v7 }
  0x38   :  { %330 = vmatprep.subr.bf16.mxu0 %v460_v0  ;;  %359 = vmatprep.subr.bf16.mxu1 %v460_v0 }
  0x3b   :  { %331 = vmatpush3.bf16.msra.mxu0 %v384_v8  ;;  %367 = vmatpush3.bf16.msra.mxu1 %v384_v8 }
  0x3e   :  { %333 = vmatmul.mubr.bf16.vlgmr.msra.gmra.mxu0 %v385_v9  ;;  %345 = vmatmul.mubr.bf16.vlgmr.msra.gmra.mxu1 %v386_v10 }
  0x3f   :  { %336 = vmatprep.mubr.msk.bf16.mxu0 %vm461_vm0, %v460_v0  ;;  %348 = vmatprep.mubr.msk.bf16.mxu1 %vm461_vm0, %v460_v0 }
  0x46   :  { %337 = vmatmul.mubr.bf16.gmra.mxu0 %v387_v11  ;;  %349 = vmatmul.mubr.bf16.gmra.mxu1 %v388_v12 }
  0x47   :  { %340 = vmatprep.mubr.msk.bf16.mxu0 %vm461_vm0, %v460_v0 }
  0x4e   :  { %341 = vmatmul.mubr.bf16.gmra.mxu0 %v389_v13 }
  0xfe   :  { %v182_v15 = vpop.f32.mrf.mxu0  ;;  %v206_v17 = vpop.f32.mrf.mxu1 }
  0xff   :  { %v227_v18 = vmul.f32 %v301_v14, %v182_v15  ;;  %v233_v19 = vmul.f32 %v301_v14, %v206_v17 }
 0x100   :  { %v334_v20 = vpop.f32.mrf.mxu0  ;;  %v346_v21 = vpop.f32.mrf.mxu1 }
 0x101   :  { %v243_v22 = vadd.f32 %v302_v16, %v227_v18  ;;  %v249_v23 = vadd.f32 %v302_v16, %v233_v19 }
 0x102   :  { %v185_v24 = vpop.f32.mrf.mxu0  ;;  %v209_v25 = vpop.f32.mrf.mxu1 }
 0x103   :  { %v252_v26 = vmax.f32 %v243_v22, 0.0  ;;  %v228_v27 = vmul.f32 %v301_v14, %v185_v24  ;;  %v258_v28 = vmax.f32 %v249_v23, 0.0  ;;  %v234_v29 = vmul.f32 %v301_v14, %v209_v25 }
 0x104   :  { %v335_v30 = vpop.f32.mrf.mxu0  ;;  %v347_v31 = vpop.f32.mrf.mxu1 }
 0x105   :  { %261 = vst [vmem:[#allocation7] sm:$0xff] %v252_v26  ;;  %v244_v32 = vadd.f32 %v302_v16, %v228_v27  ;;  %267 = vst [vmem:[#allocation7 + $0x30] sm:$0xff] %v258_v28  ;;  %v250_v33 = vadd.f32 %v302_v16, %v234_v29 }
 0x106   :  { %v190_v34 = vpop.f32.mrf.mxu0  ;;  %v214_v35 = vpop.f32.mrf.mxu1 }
 0x107   :  { %v253_v36 = vmax.f32 %v244_v32, 0.0  ;;  %v229_v37 = vmul.f32 %v301_v14, %v190_v34  ;;  %v259_v38 = vmax.f32 %v250_v33, 0.0  ;;  %v235_v39 = vmul.f32 %v301_v14, %v214_v35 }
 0x108   :  { %v338_v40 = vpop.f32.mrf.mxu0  ;;  %v350_v41 = vpop.f32.mrf.mxu1 }
 0x109   :  { %262 = vst [vmem:[#allocation7 + $0x8] sm:$0xff] %v253_v36  ;;  %v245_v42 = vadd.f32 %v302_v16, %v229_v37  ;;  %268 = vst [vmem:[#allocation7 + $0x38] sm:$0xff] %v259_v38  ;;  %v251_v43 = vadd.f32 %v302_v16, %v235_v39 }
 0x10a   :  { %v193_v44 = vpop.f32.mrf.mxu0  ;;  %v217_v45 = vpop.f32.mrf.mxu1 }
 0x10b   :  { %v254_v46 = vmax.f32 %v245_v42, 0.0  ;;  %v230_v47 = vmul.f32 %v301_v14, %v193_v44  ;;  %v260_v48 = vmax.f32 %v251_v43, 0.0 }
 0x10c   :  { %v339_v49 = vpop.f32.mrf.mxu0  ;;  %v351_v50 = vpop.f32.mrf.mxu1 }
 0x10d   :  { %263 = vst [vmem:[#allocation7 + $0x10] sm:$0xff] %v254_v46  ;;  %v246_v51 = vadd.f32 %v302_v16, %v230_v47  ;;  %269 = vst [vmem:[#allocation7 + $0x40] sm:$0xff] %v260_v48 }
 0x10e   :  { %v198_v52 = vpop.f32.mrf.mxu0 }
 0x10f   :  { %v255_v53 = vmax.f32 %v246_v51, 0.0  ;;  %v231_v54 = vmul.f32 %v301_v14, %v198_v52 }
 0x110   :  { %v342_v55 = vpop.f32.mrf.mxu0 }
 0x111   :  { %264 = vst [vmem:[#allocation7 + $0x18] sm:$0xff] %v255_v53  ;;  %v247_v56 = vadd.f32 %v302_v16, %v231_v54 }
 0x112   :  { %v201_v57 = vpop.f32.mrf.mxu0 }
 0x113   :  { %v256_v58 = vmax.f32 %v247_v56, 0.0  ;;  %v232_v59 = vmul.f32 %v301_v14, %v201_v57 }
 0x114   :  { %v343_v60 = vpop.f32.mrf.mxu0 }
 0x115   :  { %265 = vst [vmem:[#allocation7 + $0x20] sm:$0xff] %v256_v58  ;;  %v248_v61 = vadd.f32 %v302_v16, %v232_v59 }
 0x117   :  { %v257_v62 = vmax.f32 %v248_v61, 0.0 }
 0x119   :  { %266 = vst [vmem:[#allocation7 + $0x28] sm:$0xff] %v257_v62 }
 0x11a   :  { %441 = shalt.err (!%p438_p0)
}
 0x11b   :  { %s463_s30 = smov 128   ;;  %s464_s5 = smov 8  }
 0x11c   :  { %281 = dma.vmem_to_hbm [thread:$0]  %s276_s3, 1152, %s514_s4, [#allocation4], %s463_s30, %s463_s30, %s464_s5  }
 0x11d   :  { %454 = dma.done.wait [#allocation4], 1152  }
 0x11e   :  { %455 = vsyncadd [#allocation4], 4294966144 }
 0x11f   :  { %285 = vsyncpa [#allocation3], 1 }
 0x120   :  { %286 = vsyncpa [#allocation6], 1 }
 0x121   :  { %287 = vsyncpa [#allocation4], 1 }

</bundles_post_ra>
